<compile_context>
chip_gen: v5e
topology: v5e:2x2
jax: 0.10.0
libtpu: 0.0.40
codegen_flags: <defaults>
</compile_context>

<pallas_src>
import inspect
import numpy as np
import jax
import jax.numpy as jnp
from jax.experimental import pallas as pl
from jax.experimental.pallas import tpu as pltpu


# ----------------------------------------------------------------------------
# Operator construction (glue, plain numpy, done once at prepare time)
# ----------------------------------------------------------------------------
def adaptive_pool_matrix(in_size: int, out_size: int) -> np.ndarray:
    """P[i, h] so that pooled = P @ x reproduces nn.AdaptiveAvgPool1d."""
    P = np.zeros((out_size, in_size), dtype=np.float32)
    for i in range(out_size):
        start = (i * in_size) // out_size
        end = -((-(i + 1) * in_size) // out_size)  # ceil((i+1)*in/out)
        P[i, start:end] = 1.0 / float(end - start)
    return P


def bilinear_matrix(out_size: int, in_size: int) -> np.ndarray:
    """U[h, i] so that up = U @ x reproduces F.interpolate(bilinear,
    align_corners=True) along one axis."""
    U = np.zeros((out_size, in_size), dtype=np.float32)
    if in_size == 1:
        U[:, 0] = 1.0
        return U
    if out_size == 1:  # guard: single output point maps to source index 0
        U[0, 0] = 1.0
        return U
    scale = (in_size - 1) / (out_size - 1)
    for h in range(out_size):
        src = h * scale
        i0 = min(int(np.floor(src)), in_size - 1)
        i1 = min(i0 + 1, in_size - 1)
        frac = src - i0
        U[h, i0] += 1.0 - frac
        U[h, i1] += frac
    return U


# ----------------------------------------------------------------------------
# BlockSpec helpers
# ----------------------------------------------------------------------------
def _supports_single_buffering() -> bool:
    try:
        return (hasattr(pl, "Buffered")
                and "pipeline_mode" in inspect.signature(pl.BlockSpec).parameters)
    except (TypeError, ValueError):
        return False


def _const_block_spec(shape):
    """Spec for a grid-invariant operand: constant index_map (fetched once);
    single-buffered when the installed Pallas supports pipeline_mode."""
    kwargs = {}
    if _supports_single_buffering():
        kwargs["pipeline_mode"] = pl.Buffered(1)
    zeros = (0,) * len(shape)
    return pl.BlockSpec(shape, lambda n, c, _z=zeros: _z, **kwargs)


# ----------------------------------------------------------------------------
# Fused Pallas kernel, grid = (N, n_ct + n_cb)
#   steps c <  n_ct : pool + 1x1-conv accumulation + passthrough write
#   steps c >= n_ct : bias + ReLU + mask + upsample for one CB chunk
# ----------------------------------------------------------------------------
def _make_fused_kernel(n_ct: int, tc: int):
    def kernel(x_ref, kpool_ref, w_ref, bias_ref, mask_ref, kup_ref,
               out_ref, acc_ref):
        # x_ref    : (tc, HW)     f32   channel tile of one image (index clamped
        #                               to the last tile during the branch phase
        #                               -> no re-fetch, block index unchanged)
        # kpool_ref: (HW, PPpad)  bf16  fused adaptive-avg-pool operator
        # w_ref    : (CB, tc)     bf16  stacked 1x1 conv weights (BN scale folded)
        # bias_ref : (CB, 1)      f32   folded BN bias
        # mask_ref : (CB, PPpad)  bf16  per-branch 0/1 block mask
        # kup_ref  : (PPpad, HW)  bf16  fused bilinear-upsample operator
        # out_ref  : (tc, HW)     bf16  one channel tile of [x ; out1..out4]
        # acc_ref  : (CB, PPpad)  f32   conv accumulator, persists across steps
        c = pl.program_id(1)

        @pl.when(c == 0)
        def _init():
            acc_ref[...] = jnp.zeros_like(acc_ref)

        @pl.when(c < n_ct)
        def _pool_phase():
            x = x_ref[...]                                        # (tc, HW) f32
            # Passthrough: the f32->bf16 cast is fused with the single HBM read
            # of x; no separate XLA cast pass, no XLA concatenate afterwards.
            out_ref[...] = x.astype(out_ref.dtype)
            xb = x.astype(jnp.bfloat16)
            # Fused adaptive average pooling for every branch (one MXU pass).
            pooled = jnp.dot(xb, kpool_ref[...],
                             preferred_element_type=jnp.float32)  # (tc, PPpad)
            # Fused 1x1 conv (stacked branch weights), accumulated over C tiles.
            acc_ref[...] += jnp.dot(w_ref[...], pooled.astype(jnp.bfloat16),
                                    preferred_element_type=jnp.float32)

        @pl.when(c >= n_ct)
        def _branch_phase():
            j = c - n_ct                              # branch-channel chunk
            start = pl.multiple_of(j * tc, tc)
            acc = acc_ref[pl.ds(start, tc), :]                    # (tc, PPpad)
            bias = bias_ref[pl.ds(start, tc), :]                  # (tc, 1)
            mask = mask_ref[pl.ds(start, tc), :].astype(jnp.float32)
            # Folded-BN bias + ReLU, then zero cross-branch / padded columns.
            y = jnp.maximum(acc + bias, 0.0) * mask
            up = jnp.dot(y.astype(jnp.bfloat16), kup_ref[...],
                         preferred_element_type=jnp.float32)      # (tc, HW)
            out_ref[...] = up.astype(out_ref.dtype)

    return kernel


# ----------------------------------------------------------------------------
# One-time preprocessing (hoisted out of the forward path)
# ----------------------------------------------------------------------------
def prepare_pyramid_pooling(params, pool_sizes, height, width):
    """Build the fused pooling / upsample / mask operators and the BN-folded
    stacked conv weights once; they do not change across forward calls."""
    nb = len(pool_sizes)
    OC, C = params[0][0].shape
    CB = OC * nb
    H, W = height, width
    HW = H * W

    PP = sum(p * p for p in pool_sizes)
    PP_pad = ((PP + 127) // 128) * 128
    kpool_t = np.zeros((HW, PP_pad), np.float32)   # (HW, PPpad)
    kup = np.zeros((PP_pad, HW), np.float32)       # (PPpad, HW)
    mask = np.zeros((CB, PP_pad), np.float32)      # per-branch 0/1 block mask
    off = 0
    for b, p in enumerate(pool_sizes):
        ph = adaptive_pool_matrix(H, p)            # (p, H)
        pw = adaptive_pool_matrix(W, p)            # (p, W)
        kp = np.kron(ph, pw)                       # (p*p, HW)
        uh = bilinear_matrix(H, p)                 # (H, p)
        uw = bilinear_matrix(W, p)                 # (W, p)
        ku = np.kron(uh, uw)                       # (HW, p*p)
        kpool_t[:, off:off + p * p] = kp.T
        kup[off:off + p * p, :] = ku.T
        mask[b * OC:(b + 1) * OC, off:off + p * p] = 1.0
        off += p * p

    # Stacked conv weights with BN scale folded in; stacked folded BN biases.
    w_all = jnp.concatenate([params[b][0] * params[b][1] for b in range(nb)],
                            axis=0)                                   # (CB, C)
    bias_all = jnp.concatenate([params[b][2] for b in range(nb)],
                               axis=0).astype(jnp.float32)            # (CB, 1)

    return dict(
        kpool=jnp.asarray(kpool_t, dtype=jnp.bfloat16),
        kup=jnp.asarray(kup, dtype=jnp.bfloat16),
        mask=jnp.asarray(mask, dtype=jnp.bfloat16),   # 0/1 exact in bf16
        w=w_all.astype(jnp.bfloat16),
        bias=bias_all,
        C=C, CB=CB, HW=HW, PP_pad=PP_pad, height=H, width=W,
    )


# ----------------------------------------------------------------------------
# PyramidPooling forward
# ----------------------------------------------------------------------------
def pyramid_pooling_forward(x, prepared, c_tile=256):
    """x: (N, C, H, W) NCHW float32.  Returns (N, C + 4*OC, H, W) bfloat16,
    matching torch.cat([x, out1, out2, out3, out4], dim=1)."""
    N, C, H, W = x.shape
    assert C == prepared["C"] and (H, W) == (prepared["height"], prepared["width"])
    HW = H * W
    CB = prepared["CB"]
    PP_pad = prepared["PP_pad"]
    out_ch = C + CB

    # Channel tiling (same tile size for the input-channel reduction and the
    # branch-output chunking so a single tiled output covers both phases).
    tc = C if C <= c_tile else c_tile
    assert C % tc == 0 and CB % tc == 0 and tc % 8 == 0, \
        "c_tile must divide C and CB and be a multiple of 8"
    n_ct = C // tc
    n_cb = CB // tc
    assert out_ch == (n_ct + n_cb) * tc

    x_flat = x.reshape(N, C, HW)    # no-copy reshape; stays f32 (cast in-kernel)

    out = pl.pallas_call(
        _make_fused_kernel(n_ct, tc),
        out_shape=jax.ShapeDtypeStruct((N, out_ch, HW), jnp.bfloat16),
        grid_spec=pltpu.PrefetchScalarGridSpec(
            num_scalar_prefetch=0,
            grid=(N, n_ct + n_cb),
            in_specs=[
                # x: clamp the channel-tile index during the branch phase so the
                # last tile simply stays resident (no OOB DMA, no re-fetch).
                pl.BlockSpec((pl.Squeezed(), tc, HW),
                             lambda n, c: (n, jnp.minimum(c, n_ct - 1), 0)),
                _const_block_spec((HW, PP_pad)),
                pl.BlockSpec((CB, tc),
                             lambda n, c: (0, jnp.minimum(c, n_ct - 1))),
                _const_block_spec((CB, 1)),
                _const_block_spec((CB, PP_pad)),
                _const_block_spec((PP_pad, HW)),
            ],
            # Single concatenated output, tiled (tc, HW): passthrough tiles for
            # c < n_ct, branch/upsample chunks for c >= n_ct.
            out_specs=pl.BlockSpec((pl.Squeezed(), tc, HW),
                                   lambda n, c: (n, c, 0)),
            scratch_shapes=[pltpu.VMEM((CB, PP_pad), jnp.float32)],
        ),
        compiler_params=pltpu.CompilerParams(
            dimension_semantics=("parallel", "arbitrary"),
            # Above every generation's default scoped limit, below v7x's 64 MiB
            # physical VMEM; actual per-step footprint after the output split is
            # ~20 MiB at C=2048, HW=64*64, tc=256.
            vmem_limit_bytes=56 * 1024 * 1024,
        ),
    )(x_flat, prepared["kpool"], prepared["w"], prepared["bias"],
      prepared["mask"], prepared["kup"])

    return out.reshape(N, out_ch, H, W)


# ----------------------------------------------------------------------------
# Synthetic parameters + pure-JAX reference
# ----------------------------------------------------------------------------
def make_params(key, in_channels, pool_sizes):
    """Deterministic synthetic parameters (conv weight + folded BN affine)."""
    out_channels = in_channels // len(pool_sizes)
    eps = 1e-5
    params = []
    for b in range(len(pool_sizes)):
        kw, kg, kb, km, kv = jax.random.split(jax.random.fold_in(key, b), 5)
        w = 0.1 * jax.random.normal(kw, (out_channels, in_channels), jnp.float32)
        gamma = 1.0 + 0.1 * jax.random.normal(kg, (out_channels,), jnp.float32)
        beta = 0.1 * jax.random.normal(kb, (out_channels,), jnp.float32)
        rmean = 0.05 * jax.random.normal(km, (out_channels,), jnp.float32)
        rvar = 1.0 + 0.1 * jax.random.uniform(kv, (out_channels,), jnp.float32)
        scale = gamma / jnp.sqrt(rvar + eps)
        bias = beta - rmean * scale
        params.append((w, scale.reshape(-1, 1), bias.reshape(-1, 1)))
    return params


def reference_forward(x, params, pool_sizes, height, width):
    """Pure-JAX f32 reference with identical math, for sanity checking."""
    N, C, H, W = x.shape
    outs = [x]
    for b, p in enumerate(pool_sizes):
        ph = jnp.asarray(adaptive_pool_matrix(H, p))
        pw = jnp.asarray(adaptive_pool_matrix(W, p))
        uh = jnp.asarray(bilinear_matrix(H, p))
        uw = jnp.asarray(bilinear_matrix(W, p))
        w_conv, scale, bias = params[b]
        pooled = jnp.einsum('ih,nchw,jw->ncij', ph, x, pw)
        y = jnp.einsum('oc,ncij->noij', w_conv, pooled)
        y = jnp.maximum(y * scale[None, :, :, None] + bias[None, :, :, None], 0.0)
        up = jnp.einsum('hi,noij,wj->nohw', uh, y, uw)
        outs.append(up)
    return jnp.concatenate(outs, axis=1)


if __name__ == "__main__":
    key = jax.random.PRNGKey(0)
    N, C, H, W = 2, 8, 16, 16
    pool_sizes = (6, 3, 2, 1)

    kx, kp = jax.random.split(key)
    x = jax.random.normal(kx, (N, C, H, W), jnp.float32)
    params = make_params(kp, C, pool_sizes)

    prepared = prepare_pyramid_pooling(params, pool_sizes, H, W)
    out = pyramid_pooling_forward(x, prepared)
    out = jax.block_until_ready(out)
    assert out.shape == (N, 2 * C, H, W), out.shape

    # The kernel streams operators / activations in bf16 (f32 accumulation);
    # compare against an f32 reference on the bf16-rounded x, loosened tol.
    x_r = x.astype(jnp.bfloat16).astype(jnp.float32)
    ref = reference_forward(x_r, params, pool_sizes, H, W)
    out_f32 = out.astype(jnp.float32)
    if not jnp.allclose(out_f32, ref, atol=3e-2, rtol=3e-2):
        err = float(jnp.max(jnp.abs(out_f32 - ref)))
        raise AssertionError(
            f"Pallas output mismatch vs JAX reference (max abs err {err})")
    print("KERNEL_OK")
</pallas_src>

<mosaic_0001>
module attributes {stable_mosaic.version = 11 : i64} {
  func.func @kernel(%arg0: i32, %arg1: i32, %arg2: memref<1x8x256xf32, #tpu.memory_space<vmem>>, %arg3: memref<256x128xbf16, #tpu.memory_space<vmem>>, %arg4: memref<8x8xbf16, #tpu.memory_space<vmem>>, %arg5: memref<8x1xf32, #tpu.memory_space<vmem>>, %arg6: memref<8x128xbf16, #tpu.memory_space<vmem>>, %arg7: memref<128x256xbf16, #tpu.memory_space<vmem>>, %arg8: memref<1x8x256xbf16, #tpu.memory_space<vmem>>, %arg9: memref<8x128xf32, #tpu.memory_space<vmem>>) attributes {dimension_semantics = [#tpu.dimension_semantics<parallel>, #tpu.dimension_semantics<arbitrary>], iteration_bounds = array<i64: 2, 2>, scalar_prefetch = 0 : i64, scratch_operands = 1 : i64, tpu.core_type = #tpu.core_type<tc>, window_params = [{transform_indices = @transform_0, window_bounds = array<i64: 1, 8, 256>}, {pipeline_mode = #tpu.pipeline_mode<synchronous>, transform_indices = @transform_1, window_bounds = array<i64: 256, 128>}, {transform_indices = @transform_2, window_bounds = array<i64: 8, 8>}, {pipeline_mode = #tpu.pipeline_mode<synchronous>, transform_indices = @transform_3, window_bounds = array<i64: 8, 1>}, {pipeline_mode = #tpu.pipeline_mode<synchronous>, transform_indices = @transform_4, window_bounds = array<i64: 8, 128>}, {pipeline_mode = #tpu.pipeline_mode<synchronous>, transform_indices = @transform_5, window_bounds = array<i64: 128, 256>}, {transform_indices = @transform_6, window_bounds = array<i64: 1, 8, 256>}]} {
    %c0_i32 = arith.constant 0 : i32
    %0 = arith.cmpi eq, %arg1, %c0_i32 : i32
    %1 = arith.extui %0 : i1 to i32
    %c0_i32_0 = arith.constant 0 : i32
    %2 = arith.cmpi ne, %1, %c0_i32_0 : i32
    scf.if %2 {
      %cst = arith.constant 0.000000e+00 : f32
      %9 = vector.broadcast %cst : f32 to vector<8x128xf32>
      %c0 = arith.constant 0 : index
      %c0_4 = arith.constant 0 : index
      %10 = vector.load %arg9[%c0, %c0_4] : memref<8x128xf32, #tpu.memory_space<vmem>>, vector<8x128xf32>
      tpu.vector_store %arg9[%c0, %c0_4], %9 {strides = array<i32>} : memref<8x128xf32, #tpu.memory_space<vmem>>, vector<8x128xf32>,
    } else {
    }
    %c1_i32 = arith.constant 1 : i32
    %3 = arith.cmpi slt, %arg1, %c1_i32 : i32
    %4 = arith.extui %3 : i1 to i32
    %c0_i32_1 = arith.constant 0 : i32
    %5 = arith.cmpi ne, %4, %c0_i32_1 : i32
    scf.if %5 {
      %c0 = arith.constant 0 : index
      %c0_4 = arith.constant 0 : index
      %c0_5 = arith.constant 0 : index
      %9 = vector.load %arg2[%c0, %c0_4, %c0_5] : memref<1x8x256xf32, #tpu.memory_space<vmem>>, vector<1x8x256xf32>
      %10 = vector.shape_cast %9 : vector<1x8x256xf32> to vector<8x256xf32>
      %11 = arith.truncf %10 : vector<8x256xf32> to vector<8x256xbf16>
      %c0_6 = arith.constant 0 : index
      %c0_7 = arith.constant 0 : index
      %c0_8 = arith.constant 0 : index
      %12 = vector.load %arg8[%c0_6, %c0_7, %c0_8] : memref<1x8x256xbf16, #tpu.memory_space<vmem>>, vector<1x8x256xbf16>
      %13 = vector.shape_cast %12 : vector<1x8x256xbf16> to vector<8x256xbf16>
      %14 = vector.shape_cast %11 : vector<8x256xbf16> to vector<1x8x256xbf16>
      tpu.vector_store %arg8[%c0_6, %c0_7, %c0_8], %14 {strides = array<i32>} : memref<1x8x256xbf16, #tpu.memory_space<vmem>>, vector<1x8x256xbf16>,
      %15 = arith.truncf %10 : vector<8x256xf32> to vector<8x256xbf16>
      %c0_9 = arith.constant 0 : index
      %c0_10 = arith.constant 0 : index
      %16 = vector.load %arg3[%c0_9, %c0_10] : memref<256x128xbf16, #tpu.memory_space<vmem>>, vector<256x128xbf16>
      %cst = arith.constant dense<0.000000e+00> : vector<8x128xf32>
      %17 = tpu.matmul %15, %16, %cst {dimension_numbers = #tpu.dot_dimension_numbers<[1], [0], [0], [1], [0, 0, 1, 1], [], []>} : vector<8x256xbf16>, vector<256x128xbf16>, vector<8x128xf32> -> vector<8x128xf32>
      %c0_11 = arith.constant 0 : index
      %c0_12 = arith.constant 0 : index
      %18 = vector.load %arg9[%c0_11, %c0_12] : memref<8x128xf32, #tpu.memory_space<vmem>>, vector<8x128xf32>
      %c0_13 = arith.constant 0 : index
      %c0_14 = arith.constant 0 : index
      %19 = vector.load %arg4[%c0_13, %c0_14] : memref<8x8xbf16, #tpu.memory_space<vmem>>, vector<8x8xbf16>
      %20 = arith.truncf %17 : vector<8x128xf32> to vector<8x128xbf16>
      %cst_15 = arith.constant dense<0.000000e+00> : vector<8x128xf32>
      %21 = tpu.matmul %19, %20, %cst_15 {dimension_numbers = #tpu.dot_dimension_numbers<[1], [0], [0], [1], [0, 0, 1, 1], [], []>} : vector<8x8xbf16>, vector<8x128xbf16>, vector<8x128xf32> -> vector<8x128xf32>
      %22 = arith.addf %18, %21 : vector<8x128xf32>
      %c0_16 = arith.constant 0 : index
      %c0_17 = arith.constant 0 : index
      %23 = vector.load %arg9[%c0_16, %c0_17] : memref<8x128xf32, #tpu.memory_space<vmem>>, vector<8x128xf32>
      tpu.vector_store %arg9[%c0_16, %c0_17], %22 {strides = array<i32>} : memref<8x128xf32, #tpu.memory_space<vmem>>, vector<8x128xf32>,
    } else {
    }
    %c1_i32_2 = arith.constant 1 : i32
    %6 = arith.cmpi sge, %arg1, %c1_i32_2 : i32
    %7 = arith.extui %6 : i1 to i32
    %c0_i32_3 = arith.constant 0 : i32
    %8 = arith.cmpi ne, %7, %c0_i32_3 : i32
    scf.if %8 {
      %c1_i32_4 = arith.constant 1 : i32
      %9 = arith.subi %arg1, %c1_i32_4 : i32
      %c8_i32 = arith.constant 8 : i32
      %10 = arith.muli %9, %c8_i32 : i32
      %11 = tpu.assume_multiple %10, 8 : i32
      %12 = arith.index_cast %11 : i32 to index
      %c0 = arith.constant 0 : index
      %13 = vector.load %arg9[%12, %c0] : memref<8x128xf32, #tpu.memory_space<vmem>>, vector<8x128xf32>
      %14 = arith.index_cast %11 : i32 to index
      %c0_5 = arith.constant 0 : index
      %15 = vector.load %arg5[%14, %c0_5] : memref<8x1xf32, #tpu.memory_space<vmem>>, vector<8x1xf32>
      %16 = arith.index_cast %11 : i32 to index
      %c0_6 = arith.constant 0 : index
      %17 = vector.load %arg6[%16, %c0_6] : memref<8x128xbf16, #tpu.memory_space<vmem>>, vector<8x128xbf16>
      %18 = arith.extf %17 : vector<8x128xbf16> to vector<8x128xf32>
      %19 = vector.broadcast %15 : vector<8x1xf32> to vector<8x128xf32>
      %20 = arith.addf %13, %19 : vector<8x128xf32>
      %cst = arith.constant 0.000000e+00 : f32
      %21 = vector.broadcast %cst : f32 to vector<8x128xf32>
      %22 = arith.maximumf %20, %21 : vector<8x128xf32>
      %23 = arith.mulf %22, %18 : vector<8x128xf32>
      %24 = arith.truncf %23 : vector<8x128xf32> to vector<8x128xbf16>
      %c0_7 = arith.constant 0 : index
      %c0_8 = arith.constant 0 : index
      %25 = vector.load %arg7[%c0_7, %c0_8] : memref<128x256xbf16, #tpu.memory_space<vmem>>, vector<128x256xbf16>
      %cst_9 = arith.constant dense<0.000000e+00> : vector<8x256xf32>
      %26 = tpu.matmul %24, %25, %cst_9 {dimension_numbers = #tpu.dot_dimension_numbers<[1], [0], [0], [1], [0, 0, 1, 1], [], []>} : vector<8x128xbf16>, vector<128x256xbf16>, vector<8x256xf32> -> vector<8x256xf32>
      %27 = arith.truncf %26 : vector<8x256xf32> to vector<8x256xbf16>
      %c0_10 = arith.constant 0 : index
      %c0_11 = arith.constant 0 : index
      %c0_12 = arith.constant 0 : index
      %28 = vector.load %arg8[%c0_10, %c0_11, %c0_12] : memref<1x8x256xbf16, #tpu.memory_space<vmem>>, vector<1x8x256xbf16>
      %29 = vector.shape_cast %28 : vector<1x8x256xbf16> to vector<8x256xbf16>
      %30 = vector.shape_cast %27 : vector<8x256xbf16> to vector<1x8x256xbf16>
      tpu.vector_store %arg8[%c0_10, %c0_11, %c0_12], %30 {strides = array<i32>} : memref<1x8x256xbf16, #tpu.memory_space<vmem>>, vector<1x8x256xbf16>,
    } else {
    }
    return
  }
  func.func @transform_0(%arg0: i32, %arg1: i32) -> (i32, i32, i32) {
    %c0_i32 = arith.constant 0 : i32
    %0 = arith.minsi %arg1, %c0_i32 : i32
    %c0_i32_0 = arith.constant 0 : i32
    %c0_i32_1 = arith.constant 0 : i32
    return %arg0, %0, %c0_i32_0 : i32, i32, i32
  }
  func.func @transform_1(%arg0: i32, %arg1: i32) -> (i32, i32) {
    %c0_i32 = arith.constant 0 : i32
    %c0_i32_0 = arith.constant 0 : i32
    %c0_i32_1 = arith.constant 0 : i32
    return %c0_i32, %c0_i32_0 : i32, i32
  }
  func.func @transform_2(%arg0: i32, %arg1: i32) -> (i32, i32) {
    %c0_i32 = arith.constant 0 : i32
    %0 = arith.minsi %arg1, %c0_i32 : i32
    %c0_i32_0 = arith.constant 0 : i32
    %c0_i32_1 = arith.constant 0 : i32
    return %c0_i32_0, %0 : i32, i32
  }
  func.func @transform_3(%arg0: i32, %arg1: i32) -> (i32, i32) {
    %c0_i32 = arith.constant 0 : i32
    %c0_i32_0 = arith.constant 0 : i32
    %c0_i32_1 = arith.constant 0 : i32
    return %c0_i32, %c0_i32_0 : i32, i32
  }
  func.func @transform_4(%arg0: i32, %arg1: i32) -> (i32, i32) {
    %c0_i32 = arith.constant 0 : i32
    %c0_i32_0 = arith.constant 0 : i32
    %c0_i32_1 = arith.constant 0 : i32
    return %c0_i32, %c0_i32_0 : i32, i32
  }
  func.func @transform_5(%arg0: i32, %arg1: i32) -> (i32, i32) {
    %c0_i32 = arith.constant 0 : i32
    %c0_i32_0 = arith.constant 0 : i32
    %c0_i32_1 = arith.constant 0 : i32
    return %c0_i32, %c0_i32_0 : i32, i32
  }
  func.func @transform_6(%arg0: i32, %arg1: i32) -> (i32, i32, i32) {
    %c0_i32 = arith.constant 0 : i32
    %c0_i32_0 = arith.constant 0 : i32
    return %arg0, %arg1, %c0_i32 : i32, i32, i32
  }
}

</mosaic_0001>

<bundles_post_ra>
// kernel: tpu_custom_call.1
= control target key start
LH: loop header
LB: loop body
LE: loop exit
PB: predicated region body
PF: predicated region fallthrough
CT: control target
= control target key end

     0   :  { %s1684_s0 = inlined_call_operand.hbm [shape: f32[2,8,256], index: 0, kind: input, shape index: {}]   ;;  %s1685_s1 = inlined_call_operand.hbm [shape: bf16[256,128], index: 1, kind: input, shape index: {}]   ;;  %s1686_s2 = inlined_call_operand.vmem [shape: bf16[8,8], index: 2, kind: input, shape index: {}]   ;;  %s1687_s3 = inlined_call_operand.vmem [shape: f32[8,1], index: 3, kind: input, shape index: {}]   ;;  %s1688_s4 = inlined_call_operand.vmem [shape: bf16[8,128], index: 4, kind: input, shape index: {}]   ;;  %s1689_s5 = inlined_call_operand.hbm [shape: bf16[128,256], index: 5, kind: input, shape index: {}]   ;;  %s1690_s6 = inlined_call_operand.hbm [shape: bf16[2,16,256], index: 6, kind: output, shape index: {}]  }
   0x1   :  { %1696 = sst [smem:[#allocation19_spill]] %s1685_s1 }
   0x2   :  { %1697 = sst [smem:[#allocation20_spill]] %s1689_s5 }
   0x3   :  { %1698 = sst [smem:[#allocation21_spill]] %s1690_s6 }
   0x4   :  { %11 = vsyncpa [#allocation4], 0 }
   0x5   :  { %13 = vsyncpa [#allocation4 + $0x1], 0 }
   0x6   :  { %14 = vsyncpa [#allocation7], 0 }
   0x7   :  { %15 = vsyncpa [#allocation5], 0 }
   0x8   :  { %17 = vsyncpa [#allocation5 + $0x1], 0  ;;  %s1437_s21 = smov 0   ;;  %s1439_s22 = smov 0  }
   0x9   :  { %s1441_s23 = smov 0   ;;  %s1443_s24 = smov 0  }
   0xa   :  { %s1445_s25 = smov 0   ;;  %s1447_s26 = smov 0  }
   0xb   :  { %s1449_s27 = smov 0   ;;  %s1451_s28 = smov 0  }
   0xc   :  { %s1453_s29 = smov 0   ;;  %s1455_s30 = smov 0  }
   0xd   :  { %s1457_s7 = smov 0  }
   0xe LB: > { %1699 = sst [smem:[#allocation13_spill]] %s1372_s26  ;;  %s853_s8 = sadd.s32 4294967295, %s1392_s7   ;;  %s1392_s7 = sphi %s1457_s7, %s23_s7   ;;  %s1388_s30 = sphi %s1455_s30, %s1728_s30   ;;  %s1384_s29 = sphi %s1453_s29, %s1720_s29   ;;  %s1380_s28 = sphi %s1451_s28, %s1727_s28   ;;  %s1376_s27 = sphi %s1449_s27, %s1719_s27   ;;  %s1372_s26 = sphi %s1447_s26, %s1718_s26   ;;  %s1368_s25 = sphi %s1445_s25, %s1726_s25   ;;  %s1364_s24 = sphi %s1443_s24, %s1725_s24   ;;  %s1360_s23 = sphi %s1441_s23, %s1724_s23   ;;  %s1356_s22 = sphi %s1439_s22, %s1723_s22   ;;  %s1352_s21 = sphi %s1437_s21, %s1722_s21  }
   0xf   : > { %1700 = sst [smem:[#allocation14_spill]] %s1384_s29  ;;  %p855_p0 = scmp.ge.s32.totalorder %s1392_s7, 1 }
  0x10   : > { %p1494_p1 = scmp.eq.s32.totalorder %s853_s8, 0  ;;  %p1498_p2 = scmp.eq.s32.totalorder %s853_s8, 3 }
  0x11   : > { %p214_p3 = scmp.lt.s32.totalorder %s1392_s7, 5  ;;  %s1703_s1 = sld [smem:[#allocation19_spill]] }
  0x12   : > { %s1394_s15 = smov [#allocation6]   ;;  %s1705_s5 = sld [smem:[#allocation20_spill]] }
  0x13   : > { %p1506_p4 = pnand %p855_p0, %p214_p3  ;;  %s227_s16 = sshll.u32 %s1394_s15, 4  ;;  %s228_s16 = int_to_ptr.vmem [resolvable:$true] %s227_s16 }
  0x14   : > { %s1395_s20 = smov [#allocation8]   ;;  %s1396_s11 = smov 64  }
  0x15   : > { %p1057_p5 = pneg %p1506_p4  ;;  %s247_s8 = sshll.u32 %s1395_s20, 4  ;;  %s248_s8 = int_to_ptr.vmem [resolvable:$true] %s247_s8 }
  0x16   : > { %s1397_s12 = smov 4   ;;  %s1398_s15 = smov 128  }
  0x17   : > { %s225_s13 = sshll.u32 %s1703_s1, 4  ;;  %p1058_p6 = pnand %p1057_p5, %p1494_p1  ;;  %s226_s13 = int_to_ptr.hbm [resolvable:$true] %s225_s13 }
  0x18   : > { %s245_s19 = sshll.u32 %s1705_s5, 4  ;;  %s1399_s1 = smov 8   ;;  %s246_s19 = int_to_ptr.hbm [resolvable:$true] %s245_s19 }
  0x19   : > { %1060 = dma.hbm_to_vmem [thread:$0]  (!%p1058_p6), %s226_s13, 2048, %s228_s16, [#allocation7], %s1396_s11, %s1396_s11, %s1397_s12  }
  0x1a   : > { %1063 = dma.hbm_to_vmem [thread:$0]  (!%p1058_p6), %s246_s19, 2048, %s248_s8, [#allocation7], %s1398_s15, %s1398_s15, %s1399_s1  }
  0x1b   : > { %s854_s17 = sadd.s32 4294967294, %s1392_s7   ;;  %s32_s18 = sadd.s32 1, %s1384_s29 }
  0x1c   : > { %s35_s5 = sadd.s32 1, %s1388_s30  ;;  %p33_p7 = scmp.ge.s32.totalorder %s32_s18, 2 }
  0x1d   : > { %s48_s6 = sadd.s32 1, %s1372_s26  ;;  %p55_p8 = scmp.ne.s32.totalorder %s1372_s26, %s1368_s25 }
  0x1e   : > { %s1730_s18 = smov (%p33_p7, %s32_s18), 0  ;;  %s1732_s5 = smov (!%p33_p7, %s35_s5), %s1388_s30 }
  0x1f   : > { %1706 = sst [smem:[#allocation15_spill]] %s1730_s18  ;;  %p37_p9 = scmp.ge.s32.totalorder %s1732_s5, 2 }
  0x20   : > { %p56_p10 = scmp.eq.s32.totalorder %s1392_s7, 0  ;;  %p61_p11 = scmp.ne.s32.totalorder %s1368_s25, %s1364_s24 }
  0x21   : > { %s1734_s5 = smov (%p37_p9, %s1732_s5), 0  ;;  %s186_s19 = ssub.s32 %s1384_s29, %s1730_s18 }
  0x22   : > { %1707 = sst [smem:[#allocation16_spill]] %s1734_s5  ;;  %s43_s1 = ssub.s32 %s1388_s30, %s1734_s5 }
  0x23   : > { %p1533_p12 = por %p56_p10, %p55_p8  ;;  %p1539_p13 = por %p1494_p1, %p61_p11 }
  0x24   : > { %p46_p0 = scmp.eq.s32.totalorder %s43_s1, 0  ;;  %s187_s20 = sor.u32 %s186_s19, %s43_s1 }
  0x25   : > { %p188_p3 = scmp.eq.s32.totalorder %s187_s20, 0  ;;  %s190_s24 = sadd.s32 1, %s1360_s23 }
  0x26   : > { %s1547_s8 = scalar_select %p46_p0, %s1372_s26, %s48_s6  }
  0x27   : > { %s1550_s11 = scalar_select %p188_p3, %s1360_s23, %s190_s24  }
  0x28   : > { %1710 = sst [smem:[#allocation17_spill]] %s1547_s8  ;;  %p200_p5 = scmp.ne.s32.totalorder %s1360_s23, %s1356_s22 }
  0x29   : > { %1711 = sst [smem:[#allocation18_spill]] %s1550_s11  ;;  %p206_p6 = scmp.ne.s32.totalorder %s1356_s22, %s1352_s21 }
  0x2a   : > { %p207_p7 = scmp.eq.s32.totalorder %s854_s17, 3  ;;  %p1074_p8 = scmp.lt.s32.totalorder %s1392_s7, 4 }
  0x2b   : > { %p1559_p9 = por %p1498_p2, %p200_p5  ;;  %s261_s15 = sand.u32 1, %s1372_s26  }
  0x2c   : > { %p1564_p10 = por %p207_p7, %p206_p6  ;;  %s859_s1 = sshll.u32 %s261_s15, 4 }
  0x2d   : > { %s265_s19 = scalar_lea.vmem [#allocation3], %s859_s1  ;;  %s1349_s20 = sshll.u32 %s1388_s30, 4 }
  0x2e   : > { %s278_s6 = sshll.u32 %s265_s19, 4  ;;  %s274_s17 = scalar_lea.hbm %s1684_s0, %s1349_s20  ;;  %s279_s6 = int_to_ptr.vmem [resolvable:$true] %s278_s6 }
  0x2f   : > { %p1574_p11 = pnand %p1074_p8, %p1533_p12  ;;  %s276_s29 = sshll.u32 %s274_s17, 4  ;;  %s277_s29 = int_to_ptr.hbm [resolvable:$true] %s276_s29 }
  0x30   : > { %s262_s8 = scalar_lea.sflag [#allocation4], %s261_s15  ;;  %s1235_s26 = sshra.s32 %s277_s29, 4  ;;  %s1236_s26 = int_to_ptr.hbm [resolvable:$true] %s1235_s26 }
  0x31   : > { %s1237_s11 = scalar_lea.hbm %s1236_s26, 16  ;;  %p1239_p0 = pneg %p1574_p11 }
  0x32   : > { %p1238_p2 = scmp.ne.s32.totalorder %s1236_s26, %s1237_s11  ;;  %s1242_s13 = scalar_lea.hbm %s1684_s0, 32 }
  0x33   : > { %p1244_p12 = scmp.lt.s32.totalorder %s1242_s13, %s1237_s11 }
  0x34   : > { %p1240_p3 = pnand %p1239_p0, %p1238_p2 }
  0x36   : > { %p1241_p5 = pneg %p1240_p3 }
  0x38   : > { %p1246_p6 = pnand %p1244_p12, %p1241_p5 }
  0x3a   : > { %1249 = shalt.err (!%p1246_p6)
}
  0x3b   : > { %1067 = dma.hbm_to_vmem [thread:$0]  (!%p1574_p11), %s277_s29, 256, %s279_s6, %s262_s8  }
  0x3c   : > { %298 = sbr.rel (%p1506_p4) target bundleno = 681 (0x2a9), region = 44  ;;  %s300_s26 = sand.u32 (!%p1506_p4), 1, %s1368_s25  }
  0x3d   : > { %s1588_s15 = sshll.u32 (!%p1506_p4), %s300_s26, 4  ;;  %s301_s19 = scalar_lea.sflag (!%p1506_p4), [#allocation4], %s300_s26 }
  0x3e   : > { %s304_s20 = scalar_lea.vmem (!%p1506_p4), [#allocation3], %s1588_s15 }
  0x41   : > { %1338 = dma.done.wait (%p1539_p13), %s301_s19, 256  }
  0x42   : > { %1340 = vsyncadd (%p1539_p13), %s301_s19, 4294967040 }
  0x43   : > { %1342 = dma.done.wait (%p1494_p1), [#allocation7], 4096  }
  0x44   : > { %1344 = vsyncadd (%p1494_p1), [#allocation7], 4294963200  ;;  %s347_s29 = sand.u32 1, %s1356_s22   ;;  %p352_p4 = scmp.lt.s32.totalorder %s1376_s27, 0 }
  0x45   : > { %s867_s14 = sshll.u32 %s347_s29, 3  ;;  %p872_p1 = scmp.ne.s32.totalorder %s1376_s27, 0 }
  0x46   : > { %s353_s8 = scalar_select %p352_p4, %s1376_s27, 0 }
  0x47   : > { %s1609_s17 = scalar_lea.vmem [#allocation9], %s867_s14  ;;  %364 = sbr.rel (%p872_p1) target bundleno = 78 (0x4e), region = 60 }
  0x48   : > { %s1736_s8 = smov (!%p352_p4, %s353_s8), 0 }
  0x49   : > { %s871_s11 = sshll.u32 %s1736_s8, 2 }
  0x4a   : > { %s1607_s24 = scalar_lea.vmem %s1686_s2, %s871_s11 }
  0x4c   : > { %v1400_v0 = vmov 0.0  }
  0x4d   : > { %365 = vst [vmem:[#allocation2] sm:$0xff] %v1400_v0 }
  0x4e PF: > { %p873_p13 = scmp.ge.s32.totalorder %s1376_s27, 1 }
  0x50   : > { %369 = sbr.rel (%p873_p13) target bundleno = 392 (0x188), region = 64 }
  0x55   : > { %v1020_v1 = vld [vmem:[#allocation6 + $0x38] sm:$0xff]  ;;  %v1019_v3 = vld [vmem:[#allocation6 + $0x30] sm:$0xff]  ;;  %v1018_v7 = vld [vmem:[#allocation6 + $0x28] sm:$0xff]  ;;  %vm542_vm0 = vcmask 1043456   ;;  %vm538_vm1 = vcmask 64512  }
  0x56   : > { %v1028_v2 = vld [vmem:[#allocation6 + $0x78] sm:$0xff]  ;;  %509 = vmatpush.bf16.msra.mxu0 %v1020_v1  ;;  %v1027_v4 = vld [vmem:[#allocation6 + $0x70] sm:$0xff]  ;;  %v1026_v8 = vld [vmem:[#allocation6 + $0x68] sm:$0xff] }
  0x57   : > { %522 = vmatpush.bf16.msra.mxu1 %v1028_v2  ;;  %v370_v5 = vld [vmem:[%s304_s20] sm:$0xff]  ;;  %v371_v6 = vld [vmem:[%s304_s20 + $0x8] sm:$0xff] }
  0x58   : > { %v372_v9 = vpack.c.bf16 %v371_v6, %v370_v5  ;;  %v1017_v10 = vld [vmem:[#allocation6 + $0x20] sm:$0xff]  ;;  %v1016_v12 = vld [vmem:[#allocation6 + $0x18] sm:$0xff]  ;;  %v1015_v14 = vld [vmem:[#allocation6 + $0x10] sm:$0xff] }
  0x59   : > { %v1025_v11 = vld [vmem:[#allocation6 + $0x60] sm:$0xff]  ;;  %v1024_v13 = vld [vmem:[#allocation6 + $0x58] sm:$0xff]  ;;  %v1023_v15 = vld [vmem:[#allocation6 + $0x50] sm:$0xff] }
  0x5a   : > { %510 = vmatpush.bf16.msra.mxu0 %v1019_v3  ;;  %373 = vst [vmem:[%s1609_s17] sm:$0xff] %v372_v9  ;;  %v1014_v16 = vld [vmem:[#allocation6 + $0x8] sm:$0xff]  ;;  %v407_v18 = vunpack.c.l.b16 %v372_v9  ;;  %v408_v19 = vunpack.c.h.b16 %v372_v9  ;;  %v1013_v20 = vld [vmem:[#allocation6] sm:$0xff]  ;;  %v536_v29 = vld [vmem:[%s1607_s24] sm:$0xf] }
  0x5b   : > { %523 = vmatpush.bf16.msra.mxu1 %v1027_v4  ;;  %v1022_v17 = vld [vmem:[#allocation6 + $0x48] sm:$0xff]  ;;  %v1021_v21 = vld [vmem:[#allocation6 + $0x40] sm:$0xff]  ;;  %v535_v32 = vld [vmem:[#allocation2] sm:$0xff] }
  0x5c   : > { %v409_v22 = vpack.c.b16 %v407_v18, %v407_v18  ;;  %v410_v23 = vpack.c.b16 %v408_v19, %v408_v19 }
  0x5e   : > { %511 = vmatpush.bf16.msra.mxu0 %v1018_v7 }
  0x5f   : > { %524 = vmatpush.bf16.msra.mxu1 %v1026_v8 }
  0x62   : > { %512 = vmatpush.bf16.msra.mxu0 %v1017_v10 }
  0x63   : > { %525 = vmatpush.bf16.msra.mxu1 %v1025_v11 }
  0x66   : > { %513 = vmatpush.bf16.msra.mxu0 %v1016_v12 }
  0x67   : > { %526 = vmatpush.bf16.msra.mxu1 %v1024_v13 }
  0x6a   : > { %514 = vmatpush.bf16.msra.mxu0 %v1015_v14 }
  0x6b   : > { %527 = vmatpush.bf16.msra.mxu1 %v1023_v15 }
  0x6e   : > { %515 = vmatpush.bf16.msra.mxu0 %v1014_v16 }
  0x6f   : > { %528 = vmatpush.bf16.msra.mxu1 %v1022_v17 }
  0x72   : > { %516 = vmatpush.bf16.msra.mxu0 %v1013_v20 }
  0x73   : > { %529 = vmatpush.bf16.msra.mxu1 %v1021_v21 }
  0x75   : > { %517 = vmatmul.bf16.vlgmr.msra.gmra.mxu0 %v409_v22 }
  0x76   : > { %530 = vmatmul.bf16.vlgmr.msra.gmra.mxu1 %v410_v23 }
  0xf2   : > { %v518_v24 = vpop.f32.mrf.mxu0 }
  0xf3   : > { %v531_v25 = vpop.f32.mrf.mxu1 }
  0xf4   : > { %v532_v26 = vadd.f32 %v531_v25, %v518_v24 }
  0xf6   : > { %v537_v27 = vpack.c.bf16 %v532_v26, %v532_v26 }
  0xf8   : > { %v544_v28 = vsel %vm542_vm0, %v537_v27, 0 }
  0xf9   : > { %553 = vmatpush.bf16.msra.mxu2 %v544_v28 }
  0xfa   : > { %v520_v30 = vpop.f32.mrf.mxu0 }
  0xfb   : > { %v533_v31 = vpop.f32.mrf.mxu1 }
  0xfc   : > { %938 = vmatmul.msk.bf16.vlgmr.msra.gmra.mxu2 %vm538_vm1, %v536_v29 }
 0x17f   : > { %v555_v33 = vpop.f32.mrf.mxu2 }
 0x180   : > { %v559_v34 = vadd.f32 %v555_v33, %v535_v32 }
 0x182   : > { %560 = vst [vmem:[#allocation2] sm:$0xff] %v559_v34 }
 0x187   : > { %v557_v35 = vpop.f32.mrf.mxu2 }
 0x188 PF: > { %p939_p7 = scmp.lt.s32.totalorder %s1376_s27, 1 }
 0x189   : > { %s940_s9 = sadd.s32 (!%p939_p7), 4294967295, %s1376_s27 }
 0x18a   : > { %564 = sbr.rel (%p939_p7) target bundleno = 659 (0x293), region = 68  ;;  %s1617_s10 = sshll.u32 (!%p939_p7), %s940_s9, 3 }
 0x18b   : > { %s569_s13 = scalar_lea.vmem (!%p939_p7), %s1687_s3, %s1617_s10  ;;  %s571_s26 = sshra.s32 (!%p939_p7), %s1617_s10, 3 }
 0x18c   : > { %s942_s15 = sshll.u32 (!%p939_p7), %s571_s26, 2  ;;  %s567_s8 = scalar_lea.vmem (!%p939_p7), [#allocation2], %s1617_s10 }
 0x18d   : > { %s574_s14 = scalar_lea.vmem (!%p939_p7), %s1688_s4, %s942_s15 }
 0x18f   : > { %v1001_v36 = vld [vmem:[#allocation8 + $0x70] sm:$0xf]  ;;  %v1044_v37 = vld [vmem:[#allocation8 + $0x74] sm:$0xf0]  ;;  %v1401_v38 = vmov 0  }
 0x190   : > { %1174 = vset.pattern.permute.xlu0 %v1401_v38  ;;  %v1002_v39 = vor.u32 %v1044_v37, %v1001_v36  ;;  %v1043_v40 = vld [vmem:[#allocation8 + $0x74] sm:$0xf]  ;;  %v1003_v41 = vld [vmem:[#allocation8 + $0x78] sm:$0xf0]  ;;  %v993_v43 = vld [vmem:[#allocation8 + $0x60] sm:$0xf] }
 0x191   : > { %v1006_v42 = vor.u32 %v1043_v40, %v1003_v41  ;;  %v1042_v44 = vld [vmem:[#allocation8 + $0x64] sm:$0xf0]  ;;  %v1041_v45 = vld [vmem:[#allocation8 + $0x64] sm:$0xf]  ;;  %v570_v46 = vld [vmem:[%s569_s13] sm:$0xff] }
 0x192   : > { %682 = vmatpush.bf16.msra.mxu0 %v1002_v39  ;;  %v994_v47 = vor.u32 %v1042_v44, %v993_v43  ;;  %v995_v48 = vld [vmem:[#allocation8 + $0x68] sm:$0xf0]  ;;  %579 = vperm.xlu0 %1174, %v570_v46   ;;  %v985_v50 = vld [vmem:[#allocation8 + $0x50] sm:$0xf]  ;;  %v1040_v51 = vld [vmem:[#allocation8 + $0x54] sm:$0xf0] }
 0x193   : > { %695 = vmatpush.bf16.msra.mxu1 %v1006_v42  ;;  %v998_v49 = vor.u32 %v1041_v45, %v995_v48  ;;  %v1039_v52 = vld [vmem:[#allocation8 + $0x54] sm:$0xf]  ;;  %v987_v53 = vld [vmem:[#allocation8 + $0x58] sm:$0xf0]  ;;  %v986_v54 = vor.u32 %v1040_v51, %v985_v50  ;;  %v977_v56 = vld [vmem:[#allocation8 + $0x40] sm:$0xf] }
 0x194   : > { %v990_v55 = vor.u32 %v1039_v52, %v987_v53  ;;  %v1038_v57 = vld [vmem:[#allocation8 + $0x44] sm:$0xf0]  ;;  %v1037_v58 = vld [vmem:[#allocation8 + $0x44] sm:$0xf]  ;;  %v979_v59 = vld [vmem:[#allocation8 + $0x48] sm:$0xf0] }
 0x195   : > { %v978_v60 = vor.u32 %v1038_v57, %v977_v56  ;;  %v982_v61 = vor.u32 %v1037_v58, %v979_v59  ;;  %v969_v62 = vld [vmem:[#allocation8 + $0x30] sm:$0xf]  ;;  %v1036_v63 = vld [vmem:[#allocation8 + $0x34] sm:$0xf0]  ;;  %v1035_v0 = vld [vmem:[#allocation8 + $0x34] sm:$0xf] }
 0x196   : > { %683 = vmatpush.bf16.msra.mxu0 %v994_v47  ;;  %v971_v1 = vld [vmem:[#allocation8 + $0x38] sm:$0xf0]  ;;  %v970_v2 = vor.u32 %v1036_v63, %v969_v62  ;;  %v961_v4 = vld [vmem:[#allocation8 + $0x20] sm:$0xf]  ;;  %v1034_v5 = vld [vmem:[#allocation8 + $0x24] sm:$0xf0] }
 0x197   : > { %696 = vmatpush.bf16.msra.mxu1 %v998_v49  ;;  %v974_v3 = vor.u32 %v1035_v0, %v971_v1  ;;  %v1033_v6 = vld [vmem:[#allocation8 + $0x24] sm:$0xf]  ;;  %v963_v7 = vld [vmem:[#allocation8 + $0x28] sm:$0xf0]  ;;  %v962_v8 = vor.u32 %v1034_v5, %v961_v4  ;;  %v953_v10 = vld [vmem:[#allocation8 + $0x10] sm:$0xf] }
 0x198   : > { %v966_v9 = vor.u32 %v1033_v6, %v963_v7  ;;  %v1032_v11 = vld [vmem:[#allocation8 + $0x14] sm:$0xf0]  ;;  %v1031_v12 = vld [vmem:[#allocation8 + $0x14] sm:$0xf]  ;;  %v955_v14 = vld [vmem:[#allocation8 + $0x18] sm:$0xf0] }
 0x199   : > { %v954_v13 = vor.u32 %v1032_v11, %v953_v10  ;;  %v958_v15 = vor.u32 %v1031_v12, %v955_v14  ;;  %v945_v16 = vld [vmem:[#allocation8] sm:$0xf]  ;;  %v1030_v17 = vld [vmem:[#allocation8 + $0x4] sm:$0xf0]  ;;  %v1029_v18 = vld [vmem:[#allocation8 + $0x4] sm:$0xf] }
 0x19a   : > { %684 = vmatpush.bf16.msra.mxu0 %v986_v54  ;;  %v946_v19 = vor.u32 %v1030_v17, %v945_v16  ;;  %v947_v20 = vld [vmem:[#allocation8 + $0x8] sm:$0xf0]  ;;  %v568_v22 = vld [vmem:[%s567_s8] sm:$0xff] }
 0x19b   : > { %697 = vmatpush.bf16.msra.mxu1 %v990_v55  ;;  %v950_v21 = vor.u32 %v1029_v18, %v947_v20  ;;  %v575_v23 = vld [vmem:[%s574_s14] sm:$0xf] }
 0x19c   : > { %v576_v26 = vunpack.c.l.bf16 %v575_v23 }
 0x19e   : > { %685 = vmatpush.bf16.msra.mxu0 %v978_v60 }
 0x19f   : > { %698 = vmatpush.bf16.msra.mxu1 %v982_v61 }
 0x1a2   : > { %686 = vmatpush.bf16.msra.mxu0 %v970_v2 }
 0x1a3   : > { %699 = vmatpush.bf16.msra.mxu1 %v974_v3 }
 0x1a6   : > { %687 = vmatpush.bf16.msra.mxu0 %v962_v8 }
 0x1a7   : > { %700 = vmatpush.bf16.msra.mxu1 %v966_v9 }
 0x1aa   : > { %688 = vmatpush.bf16.msra.mxu0 %v954_v13 }
 0x1ab   : > { %701 = vmatpush.bf16.msra.mxu1 %v958_v15 }
 0x1ae   : > { %689 = vmatpush.bf16.msra.mxu0 %v946_v19 }
 0x1af   : > { %702 = vmatpush.bf16.msra.mxu1 %v950_v21 }
 0x204   : > { %v580_v24 = vpop.permute.xlu0 %579 }
 0x205   : > { %v582_v25 = vadd.f32 %v580_v24, %v568_v22 }
 0x207   : > { %v583_v27 = vmax.f32 %v582_v25, 0.0 }
 0x209   : > { %v584_v28 = vmul.f32 %v583_v27, %v576_v26 }
 0x20b   : > { %v585_v29 = vpack.c.bf16 %v584_v28, %v584_v28 }
 0x20d   : > { %690 = vmatmul.bf16.vlgmr.msra.gmra.mxu0 %v585_v29  ;;  %703 = vmatmul.bf16.vlgmr.msra.gmra.mxu1 %v585_v29 }
 0x28a   : > { %v691_v30 = vpop.f32.mrf.mxu0  ;;  %v704_v31 = vpop.f32.mrf.mxu1 }
 0x28b   : > { %v708_v32 = vpack.c.bf16 %v704_v31, %v691_v30 }
 0x28d   : > { %709 = vst [vmem:[%s1609_s17] sm:$0xff] %v708_v32 }
 0x292   : > { %v693_v33 = vpop.f32.mrf.mxu0  ;;  %v706_v34 = vpop.f32.mrf.mxu1 }
 0x293 PF: > { %s1008_s11 = sshll.u32 %s1376_s27, 1  ;;  %s1009_s6 = sshll.u32 %s1380_s28, 2 }
 0x294   : > { %s726_s16 = sshll.u32 %s1609_s17, 4  ;;  %s722_s24 = sadd.s32 %s1009_s6, %s1008_s11  ;;  %s727_s16 = int_to_ptr.vmem [resolvable:$true] %s726_s16 }
 0x295   : > { %s1010_s9 = sshll.u32 %s722_s24, 2  ;;  %s1715_s18 = sld [smem:[#allocation21_spill]] }
 0x296   : > { %s711_s15 = scalar_lea.sflag [#allocation5], %s347_s29 }
 0x29b   : > { %s724_s13 = scalar_lea.hbm %s1715_s18, %s1010_s9  ;;  %s1285_s17 = scalar_lea.hbm %s1715_s18, 32 }
 0x29c   : > { %s728_s26 = sshll.u32 %s724_s13, 4  ;;  %s729_s26 = int_to_ptr.hbm [resolvable:$true] %s728_s26 }
 0x29d   : > { %s1279_s19 = sshra.s32 %s729_s26, 4  ;;  %s1280_s19 = int_to_ptr.hbm [resolvable:$true] %s1279_s19 }
 0x29e   : > { %s1281_s20 = scalar_lea.hbm %s1280_s19, 8  ;;  %p1286_p0 = scmp.lt.s32.totalorder %s1280_s19, %s1715_s18 }
 0x29f   : > { %p1282_p8 = scmp.ne.s32.totalorder %s1280_s19, %s1281_s20  ;;  %p1287_p3 = scmp.lt.s32.totalorder %s1285_s17, %s1281_s20 }
 0x2a1   : > { %p1283_p11 = pnand %p1282_p8, %p1559_p9  ;;  %p1288_p5 = por %p1287_p3, %p1286_p0 }
 0x2a3   : > { %p1284_p2 = pneg %p1283_p11 }
 0x2a5   : > { %p1289_p12 = pnand %p1288_p5, %p1284_p2 }
 0x2a7   : > { %1292 = shalt.err (!%p1289_p12)
}
 0x2a8   : > { %1055 = dma.vmem_to_hbm [thread:$0]  (%p1559_p9), %s727_s16, 128, %s729_s26, %s711_s15  }
 0x2a9 PF: > { %p1077_p6 = scmp.ge.s32.totalorder %s1392_s7, 2  ;;  %s740_s29 = sand.u32 1, %s1352_s21  }
 0x2aa   : > { %s741_s11 = scalar_lea.sflag [#allocation5], %s740_s29 }
 0x2ab   : > { %p1069_p4 = pnand %p1077_p6, %p1564_p10 }
 0x2ad   : > { %p1070_p1 = pneg %p1069_p4 }
 0x2af   : > { %1346 = dma.done.wait (%p1070_p1), %s741_s11, 128  }
 0x2b0   : > { %1348 = vsyncadd (%p1070_p1), %s741_s11, 4294967168  ;;  %s23_s7 = sadd.s32 1, %s1392_s7   ;;  %s1716_s6 = sld [smem:[#allocation18_spill]] }
 0x2b1   : > { %p20_p13 = scmp.ge.s32.totalorder %s23_s7, 6   ;;  %s1717_s12 = sld [smem:[#allocation13_spill]] }
 0x2b2   : > { %s1718_s26 = sld [smem:[#allocation17_spill]]  ;;  %s1722_s21 = smov %s1356_s22 }
 0x2b3   : > { %s1719_s27 = sld [smem:[#allocation14_spill]]  ;;  %s1723_s22 = smov %s1360_s23 }
 0x2b4   : > { %s1720_s29 = sld [smem:[#allocation15_spill]]  ;;  %s1725_s24 = smov %s1368_s25 }
 0x2b5   : > { %s1721_s16 = sld [smem:[#allocation16_spill]]  ;;  %s1727_s28 = smov %s1388_s30 }
 0x2b6   : > { %s1724_s23 = smov %s1716_s6 }
 0x2b7   : > { %s1726_s25 = smov %s1717_s12  ;;  %22 = sbr.rel (!%p20_p13) target bundleno = 14 (0xe), region = 115 }
 0x2bb   : > { %s1728_s30 = smov %s1721_s16 }
 0x2bc   :  { %747 = vsyncpa [#allocation4], 1 }
 0x2bd   :  { %749 = vsyncpa [#allocation4 + $0x1], 1 }
 0x2be   :  { %750 = vsyncpa [#allocation7], 1 }
 0x2bf   :  { %751 = vsyncpa [#allocation5], 1 }
 0x2c0   :  { %753 = vsyncpa [#allocation5 + $0x1], 1 }

</bundles_post_ra>
